<compile_context>
chip_gen: v6e
topology: v6e:2x2x1
jax: 0.10.0
libtpu: 0.0.40
codegen_flags: <defaults>
</compile_context>

<pallas_src>
import functools
import math

import jax
import jax.numpy as jnp
from jax import lax
from jax.experimental import pallas as pl
from jax.experimental.pallas import tpu as pltpu


_LOG_EPS = math.log(1e-7)                   # log(0 + 1e-7)  -> non-target classes
_LOG_ONE_PLUS_EPS = math.log(1.0 + 1e-7)    # log(1 + 1e-7)  -> target class


def _sce_kernel(logits_ref, targets_ref, out_ref, *,
                alpha, beta, n_rows, tile_n, tiles_per_part, mask_rows):
    t = pl.program_id(1)

    # Zero this partition's resident partial-sum block on its first row-tile.
    @pl.when(t == 0)
    def _init():
        out_ref[...] = jnp.zeros_like(out_ref)

    # Stream in native dtype, upcast on-chip (halves HBM traffic for bf16).
    logits = logits_ref[...].astype(jnp.float32)                 # (TN, C)
    targets = targets_ref[...]                                   # (TN, 1) int32
    tn, c = logits.shape

    # ---- numerically stable softmax pieces (only NxC transcendental is exp).
    row_max = jnp.max(logits, axis=1, keepdims=True)             # (TN, 1)
    exps = jnp.exp(logits - row_max)                             # (TN, C)
    sumexp = jnp.sum(exps, axis=1, keepdims=True)                # (TN, 1)
    inv_sumexp = pl.reciprocal(sumexp, approx=False)             # (TN, 1)

    # Target selection via class-id iota (no float one-hot materialized).
    eq = lax.broadcasted_iota(jnp.int32, (tn, c), 1) == targets  # (TN, C) bool
    target_logit = jnp.sum(jnp.where(eq, logits, 0.0), axis=1, keepdims=True)

    # ---- cross entropy:  logsumexp - logits[target]
    ce_rows = (jnp.log(sumexp) + row_max) - target_logit         # (TN, 1)

    # ---- reverse cross entropy with constant-folded logs and no materialized
    # pred:  rce = -( log(eps)*sum_c clip(p) + (log(1+eps)-log(eps))*clip(p_t) )
    # clamp commutes with the positive scale:  max(e*inv, eps) = inv*max(e, eps*sumexp)
    sum_pred = inv_sumexp * jnp.sum(jnp.maximum(exps, 1e-7 * sumexp),
                                    axis=1, keepdims=True)        # (TN, 1)
    pred_tgt = jnp.maximum(jnp.exp(target_logit - row_max) * inv_sumexp, 1e-7)
    rce_rows = -(_LOG_EPS * sum_pred + (_LOG_ONE_PLUS_EPS - _LOG_EPS) * pred_tgt)

    contrib = alpha * ce_rows + beta * rce_rows                   # (TN, 1)

    if mask_rows:
        # Unclamped global tile index: ragged rows of the last real tile AND
        # whole overrun/duplicated tiles (megacore cdiv split) land >= n_rows.
        g = pl.program_id(0) * tiles_per_part + t
        row_ids = g * tile_n + lax.broadcasted_iota(jnp.int32, (tn, 1), 0)
        contrib = jnp.where(row_ids < n_rows, contrib, 0.0)

    # Accumulate the scalar tile partial-sum into element [0, 0] of this
    # partition's (8, 128) output block (full-block masked add: 1 vreg).
    total = jnp.sum(contrib)
    sel = (lax.broadcasted_iota(jnp.int32, out_ref.shape, 0)
           + lax.broadcasted_iota(jnp.int32, out_ref.shape, 1)) == 0
    out_ref[...] = out_ref[...] + jnp.where(sel, total, 0.0)


def _sublane_multiple(itemsize):
    # Packed sublane tile of the streamed dtype: f32 -> 8, bf16/fp16 -> 16,
    # int8/fp8 -> 32.
    return {4: 8, 2: 16, 1: 32}.get(itemsize, 8)


def _device_budget():
    """(input bytes per block, vmem_limit_bytes) per TPU generation."""
    kind = ""
    try:
        kind = jax.devices()[0].device_kind.lower()
    except Exception:
        pass
    if ("v5" in kind) or ("v6" in kind):
        # 128 MiB physical VMEM: fat blocks, raise the scoped limit well above
        # the 16/32 MiB defaults. HBM-bound generations benefit most here.
        return 4 << 20, 64 << 20
    # v7x (64 MiB physical VMEM / 32 MiB scoped) or unknown: stay conservative.
    return 2 << 20, 32 << 20


def _choose_tile_n(n, c, itemsize, target_block_bytes):
    # Size by the *streamed* dtype so bf16 inputs get full-size DMA blocks.
    rows = target_block_bytes // max(1, c * itemsize)
    rows = max(32, min(rows, 4096))
    rows -= rows % 32                     # multiple of 32 covers all packings
    n_pad = -(-n // 32) * 32
    return max(32, min(rows, n_pad))


def symmetric_cross_entropy_loss(logits, targets, alpha=0.1, beta=1.0, *,
                                 tile_n=None, num_partitions=2):
    """logits: (N, C) float (any float dtype), targets: (N,) int -> scalar f32."""
    n, c = logits.shape
    itemsize = jnp.dtype(logits.dtype).itemsize
    targets_col = targets.astype(jnp.int32).reshape(n, 1)

    block_bytes, vmem_limit = _device_budget()
    if tile_n is None:
        tile_n = _choose_tile_n(n, c, itemsize, block_bytes)
    sub = _sublane_multiple(itemsize)
    assert tile_n % sub == 0, f"tile_n must be a multiple of {sub} for this dtype"

    num_tiles = -(-n // tile_n)                        # cdiv
    # Always split row-tiles across TensorCores (never collapse to 1 part on
    # v7x): use cdiv for tiles_per_part, clamp the block index in the
    # index_maps, and let the row mask zero overrun/duplicated tiles.
    parts = max(1, min(int(num_partitions), num_tiles))
    tiles_per_part = -(-num_tiles // parts)            # cdiv
    mask_rows = (n % tile_n != 0) or (parts * tiles_per_part != num_tiles)

    last_tile = num_tiles - 1

    def row_block_map(p, t):
        return (jnp.minimum(p * tiles_per_part + t, last_tile), 0)

    kernel = functools.partial(
        _sce_kernel, alpha=float(alpha), beta=float(beta), n_rows=n,
        tile_n=tile_n, tiles_per_part=tiles_per_part, mask_rows=mask_rows)

    out = pl.pallas_call(
        kernel,
        # One (8,128) partial-sum block per partition; the partial lives at
        # [0,0] of its block, everything else is zero.
        out_shape=jax.ShapeDtypeStruct((parts * 8, 128), jnp.float32),
        grid_spec=pltpu.PrefetchScalarGridSpec(
            num_scalar_prefetch=0,
            grid=(parts, tiles_per_part),
            in_specs=[
                pl.BlockSpec((tile_n, c), row_block_map),
                pl.BlockSpec((tile_n, 1), row_block_map),
            ],
            out_specs=pl.BlockSpec((8, 128), lambda p, t: (p, 0)),
        ),
        compiler_params=pltpu.CompilerParams(
            dimension_semantics=("parallel", "arbitrary"),
            vmem_limit_bytes=vmem_limit),
    )(logits, targets_col)   # logits streamed in native dtype (no wrapper cast)

    # Combine per-partition partial sums and apply the mean reduction.
    return jnp.sum(out) / jnp.float32(n)


def _reference(logits, targets, alpha, beta):
    n, c = logits.shape
    logits = logits.astype(jnp.float32)
    logp = jax.nn.log_softmax(logits, axis=1)
    ce = jnp.mean(-logp[jnp.arange(n), targets])
    one_hot = jax.nn.one_hot(targets, c, dtype=jnp.float32)
    pred = jnp.clip(jax.nn.softmax(logits, axis=1), 1e-7, 1.0)
    rce = jnp.mean(-jnp.sum(pred * jnp.log(one_hot + 1e-7), axis=1))
    return alpha * ce + beta * rce


if __name__ == "__main__":
    key = jax.random.PRNGKey(0)

    configs = [
        # (n, c, tile_n override, dtype)
        (8, 16, None, jnp.float32),      # single tile, ragged rows
        (20, 16, 8, jnp.float32),        # 3 tiles -> 2 partitions, overrun tile
        (32, 16, 8, jnp.float32),        # 4 tiles, even megacore split
        (24, 128, 16, jnp.bfloat16),     # bf16 streamed natively, lane-dense C
    ]
    for i, (n, c, tn, dt) in enumerate(configs):
        k_logits, k_targets = jax.random.split(jax.random.fold_in(key, i))
        logits = jax.random.normal(k_logits, (n, c), dtype=jnp.float32).astype(dt)
        targets = jax.random.randint(k_targets, (n,), 0, c, dtype=jnp.int32)

        loss = symmetric_cross_entropy_loss(logits, targets, alpha=0.1, beta=1.0,
                                            tile_n=tn, num_partitions=2)
        jax.block_until_ready(loss)

        ref = _reference(logits, targets, 0.1, 1.0)
        assert jnp.allclose(loss, ref, rtol=1e-4, atol=1e-4), (i, loss, ref)

    print("KERNEL_OK")
</pallas_src>

<mosaic_0001>
module attributes {stable_mosaic.version = 11 : i64} {
  func.func @_sce_kernel(%arg0: i32, %arg1: i32, %arg2: memref<32x16xf32, #tpu.memory_space<vmem>>, %arg3: memref<32x1xi32, #tpu.memory_space<vmem>>, %arg4: memref<8x128xf32, #tpu.memory_space<vmem>>) attributes {dimension_semantics = [#tpu.dimension_semantics<parallel>, #tpu.dimension_semantics<arbitrary>], iteration_bounds = array<i64: 1, 1>, scalar_prefetch = 0 : i64, scratch_operands = 0 : i64, tpu.core_type = #tpu.core_type<tc>, window_params = [{transform_indices = @transform_0, window_bounds = array<i64: 32, 16>}, {transform_indices = @transform_1, window_bounds = array<i64: 32, 1>}, {transform_indices = @transform_2, window_bounds = array<i64: 8, 128>}]} {
    %c0_i32 = arith.constant 0 : i32
    %0 = arith.cmpi eq, %arg1, %c0_i32 : i32
    %1 = arith.extui %0 : i1 to i32
    %c0_i32_0 = arith.constant 0 : i32
    %2 = arith.cmpi ne, %1, %c0_i32_0 : i32
    scf.if %2 {
      %cst_23 = arith.constant 0.000000e+00 : f32
      %72 = vector.broadcast %cst_23 : f32 to vector<8x128xf32>
      %c0_24 = arith.constant 0 : index
      %c0_25 = arith.constant 0 : index
      %73 = vector.load %arg4[%c0_24, %c0_25] : memref<8x128xf32, #tpu.memory_space<vmem>>, vector<8x128xf32>
      tpu.vector_store %arg4[%c0_24, %c0_25], %72 {strides = array<i32>} : memref<8x128xf32, #tpu.memory_space<vmem>>, vector<8x128xf32>,
    } else {
    }
    %c0 = arith.constant 0 : index
    %c0_1 = arith.constant 0 : index
    %3 = vector.load %arg2[%c0, %c0_1] : memref<32x16xf32, #tpu.memory_space<vmem>>, vector<32x16xf32>
    %c0_2 = arith.constant 0 : index
    %c0_3 = arith.constant 0 : index
    %4 = vector.load %arg3[%c0_2, %c0_3] : memref<32x1xi32, #tpu.memory_space<vmem>>, vector<32x1xi32>
    %cst = arith.constant dense<0xFF800000> : vector<32xf32>
    %5 = vector.multi_reduction <maximumf>, %3, %cst [1] : vector<32x16xf32> to vector<32xf32>
    %6 = vector.shape_cast %5 : vector<32xf32> to vector<32x1xf32>
    %7 = vector.broadcast %6 : vector<32x1xf32> to vector<32x16xf32>
    %8 = arith.subf %3, %7 : vector<32x16xf32>
    %9 = math.exp %8 : vector<32x16xf32>
    %cst_4 = arith.constant dense<0.000000e+00> : vector<32xf32>
    %10 = vector.multi_reduction <add>, %9, %cst_4 [1] : vector<32x16xf32> to vector<32xf32>
    %11 = vector.shape_cast %10 : vector<32xf32> to vector<32x1xf32>
    %12 = tpu.reciprocal %11 : vector<32x1xf32> -> vector<32x1xf32>
    %13 = tpu.iota {dimensions = array<i32: 1>} : vector<32x16xi32>
    %14 = vector.broadcast %4 : vector<32x1xi32> to vector<32x16xi32>
    %15 = arith.cmpi eq, %13, %14 : vector<32x16xi32>
    %cst_5 = arith.constant 0.000000e+00 : f32
    %16 = vector.broadcast %cst_5 : f32 to vector<32x16xf32>
    %17 = arith.select %15, %3, %16 : vector<32x16xi1>, vector<32x16xf32>
    %cst_6 = arith.constant dense<0.000000e+00> : vector<32xf32>
    %18 = vector.multi_reduction <add>, %17, %cst_6 [1] : vector<32x16xf32> to vector<32xf32>
    %19 = vector.shape_cast %18 : vector<32xf32> to vector<32x1xf32>
    %20 = math.log %11 : vector<32x1xf32>
    %21 = arith.addf %20, %6 : vector<32x1xf32>
    %22 = arith.subf %21, %19 : vector<32x1xf32>
    %cst_7 = arith.constant 1.000000e-07 : f32
    %23 = vector.broadcast %cst_7 : f32 to vector<32x1xf32>
    %24 = arith.mulf %23, %11 : vector<32x1xf32>
    %25 = vector.broadcast %24 : vector<32x1xf32> to vector<32x16xf32>
    %26 = arith.maximumf %9, %25 : vector<32x16xf32>
    %cst_8 = arith.constant dense<0.000000e+00> : vector<32xf32>
    %27 = vector.multi_reduction <add>, %26, %cst_8 [1] : vector<32x16xf32> to vector<32xf32>
    %28 = vector.shape_cast %27 : vector<32xf32> to vector<32x1xf32>
    %29 = arith.mulf %12, %28 : vector<32x1xf32>
    %30 = arith.subf %19, %6 : vector<32x1xf32>
    %31 = math.exp %30 : vector<32x1xf32>
    %32 = arith.mulf %31, %12 : vector<32x1xf32>
    %cst_9 = arith.constant 1.000000e-07 : f32
    %33 = vector.broadcast %cst_9 : f32 to vector<32x1xf32>
    %34 = arith.maximumf %32, %33 : vector<32x1xf32>
    %cst_10 = arith.constant -16.1180954 : f32
    %35 = vector.broadcast %cst_10 : f32 to vector<32x1xf32>
    %36 = arith.mulf %35, %29 : vector<32x1xf32>
    %cst_11 = arith.constant 16.1180954 : f32
    %37 = vector.broadcast %cst_11 : f32 to vector<32x1xf32>
    %38 = arith.mulf %37, %34 : vector<32x1xf32>
    %39 = arith.addf %36, %38 : vector<32x1xf32>
    %cst_12 = arith.constant 0.000000e+00 : f32
    %40 = vector.broadcast %cst_12 : f32 to vector<32x1xf32>
    %41 = arith.subf %40, %39 : vector<32x1xf32>
    %cst_13 = arith.constant 1.000000e-01 : f32
    %42 = vector.broadcast %cst_13 : f32 to vector<32x1xf32>
    %43 = arith.mulf %42, %22 : vector<32x1xf32>
    %cst_14 = arith.constant 1.000000e+00 : f32
    %44 = vector.broadcast %cst_14 : f32 to vector<32x1xf32>
    %45 = arith.mulf %44, %41 : vector<32x1xf32>
    %46 = arith.addf %43, %45 : vector<32x1xf32>
    %c1_i32 = arith.constant 1 : i32
    %47 = arith.muli %arg0, %c1_i32 : i32
    %48 = arith.addi %47, %arg1 : i32
    %c32_i32 = arith.constant 32 : i32
    %49 = arith.muli %48, %c32_i32 : i32
    %50 = tpu.iota {dimensions = array<i32: 0>} : vector<32x1xi32>
    %51 = vector.broadcast %49 : i32 to vector<32x1xi32>
    %52 = arith.addi %51, %50 : vector<32x1xi32>
    %c8_i32 = arith.constant 8 : i32
    %53 = vector.broadcast %c8_i32 : i32 to vector<32x1xi32>
    %54 = arith.cmpi slt, %52, %53 : vector<32x1xi32>
    %cst_15 = arith.constant 0.000000e+00 : f32
    %55 = vector.broadcast %cst_15 : f32 to vector<32x1xf32>
    %56 = arith.select %54, %46, %55 : vector<32x1xi1>, vector<32x1xf32>
    %57 = vector.shape_cast %56 : vector<32x1xf32> to vector<1x32x1xf32>
    %cst_16 = arith.constant dense<0.000000e+00> : vector<1xf32>
    %58 = vector.multi_reduction <add>, %57, %cst_16 [1, 2] : vector<1x32x1xf32> to vector<1xf32>
    %59 = vector.shape_cast %58 : vector<1xf32> to vector<1x1x1xf32>
    %60 = vector.extract %59[0, 0, 0] : f32 from vector<1x1x1xf32>
    %61 = tpu.iota {dimensions = array<i32: 0>} : vector<8x128xi32>
    %62 = tpu.iota {dimensions = array<i32: 1>} : vector<8x128xi32>
    %63 = arith.addi %61, %62 : vector<8x128xi32>
    %c0_i32_17 = arith.constant 0 : i32
    %64 = vector.broadcast %c0_i32_17 : i32 to vector<8x128xi32>
    %65 = arith.cmpi eq, %63, %64 : vector<8x128xi32>
    %c0_18 = arith.constant 0 : index
    %c0_19 = arith.constant 0 : index
    %66 = vector.load %arg4[%c0_18, %c0_19] : memref<8x128xf32, #tpu.memory_space<vmem>>, vector<8x128xf32>
    %cst_20 = arith.constant 0.000000e+00 : f32
    %67 = vector.broadcast %60 : f32 to vector<8x128xf32>
    %68 = vector.broadcast %cst_20 : f32 to vector<8x128xf32>
    %69 = arith.select %65, %67, %68 : vector<8x128xi1>, vector<8x128xf32>
    %70 = arith.addf %66, %69 : vector<8x128xf32>
    %c0_21 = arith.constant 0 : index
    %c0_22 = arith.constant 0 : index
    %71 = vector.load %arg4[%c0_21, %c0_22] : memref<8x128xf32, #tpu.memory_space<vmem>>, vector<8x128xf32>
    tpu.vector_store %arg4[%c0_21, %c0_22], %70 {strides = array<i32>} : memref<8x128xf32, #tpu.memory_space<vmem>>, vector<8x128xf32>,
    return
  }
  func.func @transform_0(%arg0: i32, %arg1: i32) -> (i32, i32) {
    %c1_i32 = arith.constant 1 : i32
    %0 = arith.muli %arg0, %c1_i32 : i32
    %1 = arith.addi %0, %arg1 : i32
    %c0_i32 = arith.constant 0 : i32
    %2 = arith.minsi %1, %c0_i32 : i32
    %c0_i32_0 = arith.constant 0 : i32
    %c0_i32_1 = arith.constant 0 : i32
    return %2, %c0_i32_0 : i32, i32
  }
  func.func @transform_1(%arg0: i32, %arg1: i32) -> (i32, i32) {
    %c1_i32 = arith.constant 1 : i32
    %0 = arith.muli %arg0, %c1_i32 : i32
    %1 = arith.addi %0, %arg1 : i32
    %c0_i32 = arith.constant 0 : i32
    %2 = arith.minsi %1, %c0_i32 : i32
    %c0_i32_0 = arith.constant 0 : i32
    %c0_i32_1 = arith.constant 0 : i32
    return %2, %c0_i32_0 : i32, i32
  }
  func.func @transform_2(%arg0: i32, %arg1: i32) -> (i32, i32) {
    %c0_i32 = arith.constant 0 : i32
    %c0_i32_0 = arith.constant 0 : i32
    return %arg0, %c0_i32 : i32, i32
  }
}

</mosaic_0001>

<bundles_post_ra>
// kernel: tpu_custom_call.1
= control target key start
LH: loop header
LB: loop body
LE: loop exit
PB: predicated region body
PF: predicated region fallthrough
CT: control target
= control target key end

     0   :  { %vm109_vm0 = vcmask 130048   ;;  %s404_s0 = inlined_call_operand.vmem [shape: f32[8,16], index: 0, kind: input, shape index: {}]   ;;  %s405_s1 = inlined_call_operand.vmem [shape: s32[8,1], index: 1, kind: input, shape index: {}]   ;;  %s406_s2 = inlined_call_operand.hbm [shape: f32[8,128], index: 2, kind: output, shape index: {}]  }
   0x1   :  { %v101_v0 = vld [vmem:[%s404_s0] sm:$0xff] }
   0x2   :  { %7 = vsyncpa [#allocation3], 0  ;;  %v110_v1 = vsel %vm109_vm0, %v101_v0, -inf  ;;  %v374_v2 = vmov 0   ;;  %v105_v3 = vld [vmem:[%s405_s1] sm:$0xff]  ;;  %v150_v7 = vlaneseq  ;;  %vm288_vm2 = vcmask 7168  }
   0x3   :  { %343 = vset.pattern.permute.xlu0 %v374_v2  ;;  %s375_s1 = smov [#allocation2]  }
   0x4   :  { %111 = vmax.xlane.f32.xlu0 %v110_v1  ;;  %v151_v8 = vand.u32 127, %v150_v7  ;;  %v271_v45 = vshrl.u32 %v150_v7, 7  ;;  %s318_s13 = sshll.u32 %s375_s1, 4  ;;  %s319_s13 = int_to_ptr.vmem [resolvable:$true] %s318_s13 }
   0x5   :  { %s352_s14 = scalar_lea.vmem %s319_s13, 128  ;;  %p357_p1 = scmp.lt.s32.totalorder %s319_s13, %s319_s13 }
   0x6   :  { %v305_v46 = vadd.s32 %v271_v45, %v151_v8  ;;  %p353_p0 = scmp.ne.s32.totalorder %s319_s13, %s352_s14  ;;  %p358_p2 = scmp.lt.s32.totalorder %s352_s14, %s352_s14 }
   0x8   :  { %vm306_vm3 = vcmp.eq.s32.totalorder %v305_v46, 0  ;;  %p359_p3 = por %p358_p2, %p357_p1 }
   0xa   :  { %p360_p4 = pnand %p359_p3, %p353_p0 }
  0x1a   :  { %153 = vperm.xlu0 %343, %v105_v3  }
  0x8d   :  { %v112_v4 = vpop.xlane.xlu0 %111 }
  0x8e   :  { %v122_v5 = vsub.f32 %v101_v0, %v112_v4 }
  0x90   :  { %v126_v6 = vmul.f32 1.442695, %v122_v5 }
  0x92   :  { %344 = vpow2.f32 %v126_v6 }
  0x95   :  { %v154_v9 = vpop.permute.xlu0 %153 }
  0x96   :  { %vm164_vm1 = vcmp.eq.s32.totalorder %v151_v8, %v154_v9 }
  0x97   :  { %v168_v11 = vsel %vm164_vm1, %v101_v0, 0.0 }
  0x98   :  { %v172_v13 = vsel %vm109_vm0, %v168_v11, 0.0 }
  0x9f   :  { %v345_v10 = vpop.eup %344 }
  0xa0   :  { %v134_v12 = vsel %vm109_vm0, %v345_v10, 0.0 }
  0xa1   :  { %135 = vadd.xlane.f32.xlu1 %v134_v12 }
  0xa5   :  { %173 = vadd.xlane.f32.xlu1 %v172_v13 }
 0x12a   :  { %v136_v14 = vpop.xlane.xlu1 %135 }
 0x12b   :  { %v200_v15 = vmul.f32 1e-07, %v136_v14  ;;  %346 = vlog2.f32 %v136_v14 }
 0x12d   :  { %v204_v16 = vmax.f32 %v345_v10, %v200_v15 }
 0x12e   :  { %v174_v18 = vpop.xlane.xlu1 %173 }
 0x12f   :  { %v208_v17 = vsel %vm109_vm0, %v204_v16, 0.0  ;;  %v224_v19 = vsub.f32 %v174_v18, %v112_v4 }
 0x130   :  { %209 = vadd.xlane.f32.xlu1 %v208_v17 }
 0x131   :  { %v228_v20 = vmul.f32 1.442695, %v224_v19 }
 0x133   :  { %348 = vpow2.f32 %v228_v20 }
 0x134   :  { %350 = vrcp.f32 %v136_v14 }
 0x138   :  { %v347_v21 = vpop.eup %346 }
 0x139   :  { %v185_v24 = vmul.f32 0.6931472, %v347_v21 }
 0x13b   :  { %v192_v26 = vadd.f32 %v185_v24, %v112_v4 }
 0x13d   :  { %v196_v30 = vsub.f32 %v192_v26, %v174_v18 }
 0x13f   :  { %v260_v34 = vmul.f32 0.1, %v196_v30 }
 0x140   :  { %v349_v22 = vpop.eup %348 }
 0x141   :  { %v351_v23 = vpop.eup %350 }
 0x142   :  { %v236_v25 = vmul.f32 %v351_v23, %v349_v22 }
 0x144   :  { %v240_v27 = vmax.f32 %v236_v25, 1e-07 }
 0x146   :  { %v248_v31 = vmul.f32 16.118095, %v240_v27 }
 0x1b9   :  { %v210_v28 = vpop.xlane.xlu1 %209 }
 0x1ba   :  { %v220_v29 = vmul.f32 %v351_v23, %v210_v28 }
 0x1bc   :  { %v244_v32 = vmul.f32 -16.118095, %v220_v29 }
 0x1be   :  { %v252_v33 = vadd.f32 %v248_v31, %v244_v32 }
 0x1c0   :  { %v256_v35 = vsub.f32 0.0, %v252_v33 }
 0x1c2   :  { %v264_v36 = vadd.f32 %v260_v34, %v256_v35 }
 0x1c4   :  { %v289_v37 = vsel %vm288_vm2, %v264_v36, 0.0 }
 0x1c5   :  { %296 = vadd.xlane.f32.xlu1 %v289_v37 }
 0x24e   :  { %v297_v38 = vpop.xlane.xlu1 %296 }
 0x24f   :  { %v298_v39 = vrot.slane %v297_v38, 4 }
 0x251   :  { %v299_v40 = vadd.f32 %v298_v39, %v297_v38 }
 0x253   :  { %v300_v41 = vrot.slane %v299_v40, 2 }
 0x255   :  { %v301_v42 = vadd.f32 %v300_v41, %v299_v40 }
 0x257   :  { %v302_v43 = vrot.slane %v301_v42, 1 }
 0x259   :  { %v303_v44 = vadd.f32 %v302_v43, %v301_v42 }
 0x25b   :  { %338 = vpush %v303_v44 }
 0x28c   :  { %s339_s0 = spop %338 }
 0x28d   :  { %v308_v47 = vstv %s339_s0 }
 0x28e   :  { %v309_v48 = vsel %vm306_vm3, %v308_v47, 0.0 }
 0x28f   :  { %311 = vst [vmem:[#allocation2] sm:$0xff] %v309_v48 }
 0x290   :  { %363 = shalt.err (!%p360_p4)
}
 0x291   :  { %321 = dma.vmem_to_hbm [thread:$0]  %s319_s13, 128, %s406_s2, [#allocation3]  }
 0x292   :  { %372 = dma.done.wait [#allocation3], 128  }
 0x293   :  { %373 = vsyncadd [#allocation3], 4294967168 }
 0x294   :  { %325 = vsyncpa [#allocation3], 1 }

</bundles_post_ra>
